<compile_context>
chip_gen: v6e
topology: v6e:2x2x1
jax: 0.10.0
libtpu: 0.0.40
codegen_flags: <defaults>
</compile_context>

<pallas_src>
import functools

import jax
import jax.numpy as jnp
from jax.experimental import pallas as pl
from jax.experimental.pallas import tpu as pltpu

_F32_MAX = float(jnp.finfo(jnp.float32).max)
_LANE = 128

# VMEM accounting: keep per-step (double-buffered) blocks under the budget and
# ask Mosaic for a scoped limit slightly above it.  48 MiB is safe on every
# generation (v7x physical VMEM is 64 MiB/TC; v5e/v6e have 128 MiB) and well
# above the 16/32 MiB scoped defaults.
_VMEM_BLOCK_BUDGET = 40 * 1024 * 1024
_VMEM_LIMIT_BYTES = 48 * 1024 * 1024


def _round_up(n, m):
    return -(-int(n) // m) * m


def _choose_tm(batch, block_rows, row_bytes, fixed_bytes, *, min_grid=2):
    """Pick the batch-tile height.

    row_bytes   : VMEM bytes per batch row for batch-tiled operands (x / out),
                  counting double buffering.
    fixed_bytes : VMEM bytes for grid-invariant operands (W, bias), counting
                  double buffering.
    min_grid    : keep >= this many grid steps when the batch allows, so the
                  "parallel" axis has work for both v7x TensorCores.
    """
    budget = max(_VMEM_BLOCK_BUDGET - fixed_bytes, 1 << 20)
    tm_cap = max(8, (budget // max(row_bytes, 1)) // 8 * 8)
    tm = max(8, min(int(block_rows), tm_cap) // 8 * 8)
    if batch <= tm:
        if batch >= 8 * min_grid:
            # Split the batch across >= min_grid steps (rounded to sublane 8).
            tm = _round_up(-(-batch // min_grid), 8)
        else:
            # Tiny batch: single step; block == full dim is always legal.
            tm = batch
    return tm


# ---------------------------------------------------------------------------
# Kernels
# ---------------------------------------------------------------------------

def _sample_feature_kernel(x_ref, w_ref, b_ref, o_ref, *, eps):
    # v = nan_to_num(exp(x @ W + b)) + eps
    # W arrives pre-cast (cached at init); x is cast to W's dtype here so the
    # wrapper never issues a separate, un-fused cast op over HBM.
    w = w_ref[...]
    x = x_ref[...].astype(w.dtype)
    v = jnp.dot(x, w, preferred_element_type=jnp.float32)
    v = v + b_ref[...]
    v = jnp.exp(v)  # EUP slot
    # exp never yields -inf and is NaN only for NaN input, so full nan_to_num
    # reduces to: NaN -> 0, clamp +inf -> f32 max.
    v = jnp.where(jnp.isnan(v), 0.0, jnp.minimum(v, _F32_MAX))
    o_ref[...] = (v + eps).astype(o_ref.dtype)


def _linear_kernel(xm_ref, a_ref, o_ref, *, eps):
    # v = clamp(nan_to_num(a1 * x_m + a0), min=eps)
    # a = [a1, a0] lives in SMEM -> scalar loads, no (8,128) VMEM padding.
    a1 = a_ref[0]
    a0 = a_ref[1]
    v = a1 * xm_ref[...] + a0
    # nan_to_num then clamp(min=eps): NaN -> eps, +/-inf handled by min/max.
    v = jnp.where(jnp.isnan(v), eps, jnp.maximum(jnp.minimum(v, _F32_MAX), eps))
    o_ref[...] = v.astype(o_ref.dtype)


# ---------------------------------------------------------------------------
# pallas_call wrappers (jitted; 1-D batch grid with "parallel" semantics)
# ---------------------------------------------------------------------------

@functools.partial(jax.jit,
                   static_argnames=("eps", "block_rows", "min_grid", "out_dtype"))
def var_encoder_sample_feature(x, w, b, *, eps, block_rows=4096, min_grid=2,
                               out_dtype=jnp.float32):
    B, H = x.shape
    _, O = w.shape  # O may already be lane-padded to a multiple of 128
    out_dtype = jnp.dtype(out_dtype)
    row_bytes = 2 * (H * x.dtype.itemsize + O * out_dtype.itemsize)
    fixed_bytes = 2 * (H * O * w.dtype.itemsize + O * b.dtype.itemsize)
    tm = _choose_tm(B, block_rows, row_bytes, fixed_bytes, min_grid=min_grid)
    grid = (pl.cdiv(B, tm),)
    bytes_accessed = (B * H * x.dtype.itemsize + H * O * w.dtype.itemsize
                      + O * b.dtype.itemsize + B * O * out_dtype.itemsize)
    return pl.pallas_call(
        functools.partial(_sample_feature_kernel, eps=eps),
        grid=grid,
        in_specs=[
            pl.BlockSpec((tm, H), lambda i: (i, 0)),   # x: batch-tiled
            pl.BlockSpec((H, O), lambda i: (0, 0)),    # W: resident across grid
            pl.BlockSpec((1, O), lambda i: (0, 0)),    # bias: resident
        ],
        out_specs=pl.BlockSpec((tm, O), lambda i: (i, 0)),
        out_shape=jax.ShapeDtypeStruct((B, O), out_dtype),
        compiler_params=pltpu.CompilerParams(
            dimension_semantics=("parallel",),
            vmem_limit_bytes=_VMEM_LIMIT_BYTES),
        cost_estimate=pl.CostEstimate(
            flops=2 * B * H * O, transcendentals=B * O,
            bytes_accessed=bytes_accessed),
    )(x, w, b)


@functools.partial(jax.jit, static_argnames=("eps", "block_rows", "min_grid"))
def var_encoder_linear(x_m, a, *, eps, block_rows=4096, min_grid=2):
    B, O = x_m.shape
    row_bytes = 2 * (O * x_m.dtype.itemsize + O * 4)
    tm = _choose_tm(B, block_rows, row_bytes, 0, min_grid=min_grid)
    grid = (pl.cdiv(B, tm),)
    return pl.pallas_call(
        functools.partial(_linear_kernel, eps=eps),
        grid=grid,
        in_specs=[
            pl.BlockSpec((tm, O), lambda i: (i, 0)),             # x_m: batch-tiled
            pl.BlockSpec(memory_space=pltpu.MemorySpace.SMEM),   # [a1, a0] scalars
        ],
        out_specs=pl.BlockSpec((tm, O), lambda i: (i, 0)),
        out_shape=jax.ShapeDtypeStruct((B, O), jnp.float32),
        compiler_params=pltpu.CompilerParams(
            dimension_semantics=("parallel",),
            vmem_limit_bytes=_VMEM_LIMIT_BYTES),
        cost_estimate=pl.CostEstimate(
            flops=2 * B * O, transcendentals=0,
            bytes_accessed=B * O * (x_m.dtype.itemsize + 4) + 8),
    )(x_m, a)


def var_encoder_feature(var_param, *, eps, batch):
    # Per review: a (1, n_output) row is far below pallas_call launch + DMA
    # overhead, so compute it in plain jnp and broadcast lazily (XLA fuses the
    # row math + broadcast into the consumer; no B identical rows hit HBM here).
    v = jnp.exp(var_param.astype(jnp.float32))
    v = jnp.where(jnp.isnan(v), 0.0, jnp.minimum(v, _F32_MAX)) + eps
    return jnp.broadcast_to(v, (batch, var_param.shape[-1]))


# ---------------------------------------------------------------------------
# Module wrapper (mirrors VarEncoder.forward)
# ---------------------------------------------------------------------------

class VarEncoderPallas:
    """Pallas port of VarEncoder (modes: 'sample_feature' / 'feature' / 'linear')."""

    def __init__(self, n_hidden, n_output, mode: str, eps: float = 1e-4, key=None,
                 block_rows: int = 4096, min_grid: int = 2,
                 matmul_dtype=jnp.float32, out_dtype=jnp.float32):
        self.eps = float(eps)
        self.mode = mode
        self.n_hidden = int(n_hidden)
        self.n_output = int(n_output)
        self.block_rows = int(block_rows)
        self.min_grid = int(min_grid)
        self.matmul_dtype = jnp.dtype(matmul_dtype)
        self.out_dtype = jnp.dtype(out_dtype)
        if key is None:
            key = jax.random.PRNGKey(0)
        if mode == "sample_feature":
            # torch.nn.Linear init: U(-1/sqrt(fan_in), 1/sqrt(fan_in)),
            # stored pre-transposed as (n_hidden, n_output).
            kw_, kb_ = jax.random.split(key)
            bound = 1.0 / (n_hidden ** 0.5)
            w = jax.random.uniform(kw_, (n_hidden, n_output), jnp.float32,
                                   -bound, bound)
            b = jax.random.uniform(kb_, (1, n_output), jnp.float32, -bound, bound)
            # Lane-dense output: if n_output < 128, zero-pad columns once at init
            # so the kernel writes full 128-lane vregs; slice back in __call__.
            self.o_pad = _round_up(n_output, _LANE) if n_output < _LANE else n_output
            if self.o_pad != n_output:
                w = jnp.pad(w, ((0, 0), (0, self.o_pad - n_output)))
                b = jnp.pad(b, ((0, 0), (0, self.o_pad - n_output)))
            # Cache W in the matmul dtype ONCE (no recurring per-call cast);
            # bias stays f32 and is added to the f32 accumulator.
            self.w = w.astype(self.matmul_dtype)
            self.b = b
        elif mode == "feature":
            self.var_param = jnp.zeros((1, n_output), jnp.float32)
        elif mode == "linear":
            # [a1, a0] packed for the SMEM scalar path.
            self.var_param_a = jnp.array([1.0, self.eps], jnp.float32)
        else:
            raise ValueError("Mode not recognised.")

    def __call__(self, x, x_m):
        if self.mode == "sample_feature":
            out = var_encoder_sample_feature(
                x, self.w, self.b, eps=self.eps, block_rows=self.block_rows,
                min_grid=self.min_grid, out_dtype=self.out_dtype)
            if self.o_pad != self.n_output:
                out = out[:, :self.n_output]
            return out
        elif self.mode == "feature":
            return var_encoder_feature(self.var_param, eps=self.eps,
                                       batch=x.shape[0])
        elif self.mode == "linear":
            # torch's x_m.detach().clone() only affects autograd; forward no-op.
            return var_encoder_linear(x_m, self.var_param_a, eps=self.eps,
                                      block_rows=self.block_rows,
                                      min_grid=self.min_grid)
        else:
            raise ValueError("Mode not recognised.")


# ---------------------------------------------------------------------------
# Pure-JAX reference (matches torch semantics) for sanity check
# ---------------------------------------------------------------------------

def _ref(enc: VarEncoderPallas, x, x_m):
    if enc.mode == "sample_feature":
        w = enc.w[:, :enc.n_output]
        b = enc.b[:, :enc.n_output]
        xc = x.astype(enc.matmul_dtype)
        v = jnp.dot(xc, w, preferred_element_type=jnp.float32) + b
        v = jnp.nan_to_num(jnp.exp(v)) + enc.eps
        return v.astype(enc.out_dtype)
    elif enc.mode == "feature":
        v = jnp.broadcast_to(enc.var_param, (x.shape[0], enc.n_output))
        return jnp.nan_to_num(jnp.exp(v)) + enc.eps
    else:
        a1, a0 = enc.var_param_a[0], enc.var_param_a[1]
        v = a1 * x_m + a0
        return jnp.maximum(jnp.nan_to_num(v), enc.eps)


if __name__ == "__main__":
    key = jax.random.PRNGKey(0)
    kx, kxm, kp = jax.random.split(key, 3)

    # Small, lane-friendly shapes: n_output = 128 keeps output stores lane-dense;
    # the n_output=32 config exercises the lane-padding path; batch=64 with the
    # default tiling exercises the >=2-step "parallel" grid split, and the
    # block_rows=16 configs exercise a real 4-step batch grid.
    batch, n_hidden, n_output = 64, 32, 128
    x = jax.random.normal(kx, (batch, n_hidden), jnp.float32)
    x_m = jax.random.normal(kxm, (batch, n_output), jnp.float32)

    configs = [
        # (mode, ctor kwargs, n_output, tolerance)
        ("sample_feature", dict(block_rows=16), n_output, 1e-5),
        ("sample_feature", dict(), n_output, 1e-5),
        ("sample_feature", dict(matmul_dtype=jnp.bfloat16), n_output, 2e-2),
        ("sample_feature", dict(out_dtype=jnp.bfloat16), n_output, 5e-2),
        ("sample_feature", dict(), 32, 1e-5),          # O < 128: lane-padding path
        ("feature", dict(), n_output, 1e-6),
        ("linear", dict(block_rows=16), n_output, 1e-6),
        ("linear", dict(), n_output, 1e-6),
    ]

    ok = True
    for mode, kw, n_out, tol in configs:
        enc = VarEncoderPallas(n_hidden, n_out, mode=mode, eps=1e-4, key=kp, **kw)
        xm = x_m[:, :n_out]
        out = jax.block_until_ready(enc(x, xm))
        ref = _ref(enc, x, xm)
        o32 = out.astype(jnp.float32)
        r32 = ref.astype(jnp.float32)
        if out.shape != ref.shape or not jnp.allclose(o32, r32, atol=tol, rtol=tol):
            ok = False
            err = float(jnp.max(jnp.abs(o32 - r32)))
            print(f"MISMATCH mode={mode} n_out={n_out} cfg={kw} max_abs_err={err}")

    if ok:
        print("KERNEL_OK")
</pallas_src>

<mosaic_0001>
module attributes {stable_mosaic.version = 11 : i64} {
  func.func @_sample_feature_kernel(%arg0: i32, %arg1: memref<16x32xf32, #tpu.memory_space<vmem>>, %arg2: memref<32x128xf32, #tpu.memory_space<vmem>>, %arg3: memref<1x128xf32, #tpu.memory_space<vmem>>, %arg4: memref<16x128xf32, #tpu.memory_space<vmem>>) attributes {dimension_semantics = [#tpu.dimension_semantics<parallel>], iteration_bounds = array<i64: 4>, scalar_prefetch = 0 : i64, scratch_operands = 0 : i64, tpu.core_type = #tpu.core_type<tc>, window_params = [{transform_indices = @transform_0, window_bounds = array<i64: 16, 32>}, {pipeline_mode = #tpu.pipeline_mode<synchronous>, transform_indices = @transform_1, window_bounds = array<i64: 32, 128>}, {pipeline_mode = #tpu.pipeline_mode<synchronous>, transform_indices = @transform_2, window_bounds = array<i64: 1, 128>}, {transform_indices = @transform_3, window_bounds = array<i64: 16, 128>}]} {
    %c0 = arith.constant 0 : index
    %c0_0 = arith.constant 0 : index
    %0 = vector.load %arg2[%c0, %c0_0] : memref<32x128xf32, #tpu.memory_space<vmem>>, vector<32x128xf32>
    %c0_1 = arith.constant 0 : index
    %c0_2 = arith.constant 0 : index
    %1 = vector.load %arg1[%c0_1, %c0_2] : memref<16x32xf32, #tpu.memory_space<vmem>>, vector<16x32xf32>
    %cst = arith.constant dense<0.000000e+00> : vector<16x128xf32>
    %2 = tpu.matmul %1, %0, %cst {dimension_numbers = #tpu.dot_dimension_numbers<[1], [0], [0], [1], [0, 0, 1, 1], [], []>} : vector<16x32xf32>, vector<32x128xf32>, vector<16x128xf32> -> vector<16x128xf32>
    %c0_3 = arith.constant 0 : index
    %c0_4 = arith.constant 0 : index
    %3 = vector.load %arg3[%c0_3, %c0_4] : memref<1x128xf32, #tpu.memory_space<vmem>>, vector<1x128xf32>
    %4 = vector.broadcast %3 : vector<1x128xf32> to vector<16x128xf32>
    %5 = arith.addf %2, %4 : vector<16x128xf32>
    %6 = math.exp %5 : vector<16x128xf32>
    %7 = arith.cmpf one, %6, %6 : vector<16x128xf32>
    %cst_5 = arith.constant 3.40282347E+38 : f32
    %8 = vector.broadcast %cst_5 : f32 to vector<16x128xf32>
    %9 = arith.minimumf %6, %8 : vector<16x128xf32>
    %cst_6 = arith.constant 0.000000e+00 : f32
    %10 = vector.broadcast %cst_6 : f32 to vector<16x128xf32>
    %11 = arith.select %7, %10, %9 : vector<16x128xi1>, vector<16x128xf32>
    %cst_7 = arith.constant 9.99999974E-5 : f32
    %12 = vector.broadcast %cst_7 : f32 to vector<16x128xf32>
    %13 = arith.addf %11, %12 : vector<16x128xf32>
    %c0_8 = arith.constant 0 : index
    %c0_9 = arith.constant 0 : index
    %14 = vector.load %arg4[%c0_8, %c0_9] : memref<16x128xf32, #tpu.memory_space<vmem>>, vector<16x128xf32>
    tpu.vector_store %arg4[%c0_8, %c0_9], %13 {strides = array<i32>} : memref<16x128xf32, #tpu.memory_space<vmem>>, vector<16x128xf32>,
    return
  }
  func.func @transform_0(%arg0: i32) -> (i32, i32) {
    %c0_i32 = arith.constant 0 : i32
    %c0_i32_0 = arith.constant 0 : i32
    return %arg0, %c0_i32 : i32, i32
  }
  func.func @transform_1(%arg0: i32) -> (i32, i32) {
    %c0_i32 = arith.constant 0 : i32
    %c0_i32_0 = arith.constant 0 : i32
    %c0_i32_1 = arith.constant 0 : i32
    return %c0_i32, %c0_i32_0 : i32, i32
  }
  func.func @transform_2(%arg0: i32) -> (i32, i32) {
    %c0_i32 = arith.constant 0 : i32
    %c0_i32_0 = arith.constant 0 : i32
    %c0_i32_1 = arith.constant 0 : i32
    return %c0_i32, %c0_i32_0 : i32, i32
  }
  func.func @transform_3(%arg0: i32) -> (i32, i32) {
    %c0_i32 = arith.constant 0 : i32
    %c0_i32_0 = arith.constant 0 : i32
    return %arg0, %c0_i32 : i32, i32
  }
}

</mosaic_0001>

<bundles_post_ra>
// kernel: var_encoder_sample_feature.1
= control target key start
LH: loop header
LB: loop body
LE: loop exit
PB: predicated region body
PF: predicated region fallthrough
CT: control target
= control target key end

     0   :  { %8 = vsyncpa [#allocation3], 0  ;;  %s636_s0 = inlined_call_operand.vmem [shape: f32[64,32], index: 0, kind: input, shape index: {}]   ;;  %s637_s1 = inlined_call_operand.vmem [shape: f32[32,128], index: 1, kind: input, shape index: {}]   ;;  %s638_s2 = inlined_call_operand.vmem [shape: f32[1,128], index: 2, kind: input, shape index: {}]   ;;  %s639_s3 = inlined_call_operand.hbm [shape: f32[64,128], index: 3, kind: output, shape index: {}]  }
   0x1   :  { %10 = vsyncpa [#allocation3 + $0x1], 0  ;;  %s520_s12 = smov 0   ;;  %s522_s13 = smov 0  }
   0x2   :  { %s524_s14 = smov 0   ;;  %s526_s15 = smov 0  }
   0x3 LB: > { %s541_s16 = sadd.s32 4294967295, %s495_s15   ;;  %s357_s17 = sadd.s32 4294967294, %s495_s15   ;;  %s495_s15 = sphi %s526_s15, %s645_s15   ;;  %s491_s14 = sphi %s524_s14, %s644_s14   ;;  %s487_s13 = sphi %s522_s13, %s643_s13   ;;  %s483_s12 = sphi %s520_s12, %s642_s12  }
   0x4   : > { %s545_s18 = sadd.s32 1, %s495_s15   ;;  %s91_s19 = sadd.s32 1, %s491_s14 }
   0x5   : > { %s88_s20 = ssub.s32 %s495_s15, %s545_s18  ;;  %p101_p0 = scmp.ne.s32.totalorder %s491_s14, %s487_s13 }
   0x6   : > { %p89_p1 = scmp.eq.s32.totalorder %s88_s20, 0  ;;  %p102_p2 = scmp.eq.s32.totalorder %s541_s16, 3 }
   0x7   : > { %p107_p3 = scmp.ne.s32.totalorder %s487_s13, %s483_s12  ;;  %p108_p4 = scmp.eq.s32.totalorder %s357_s17, 3 }
   0x8   : > { %s556_s21 = scalar_select %p89_p1, %s491_s14, %s91_s19  }
   0x9   : > { %p558_p5 = por %p102_p2, %p101_p0  ;;  %p562_p6 = por %p108_p4, %p107_p3 }
   0xa   : > { %p360_p7 = scmp.ge.s32.totalorder %s495_s15, 1  ;;  %p141_p8 = scmp.lt.s32.totalorder %s495_s15, 5 }
   0xc   : > { %p142_p9 = pnand %p360_p7, %p141_p8 }
   0xd   : > { %s362_s28 = sshll.u32 (!%p142_p9), %s541_s16, 1  ;;  %s162_s17 = sand.u32 (!%p142_p9), 1, %s487_s13  }
   0xe   : > { %145 = sbr.rel (%p142_p9) target bundleno = 260 (0x104), region = 32  ;;  %p166_p10 = scmp.lt.s32.totalorder (!%p142_p9), %s362_s28, 7 }
   0xf   : > { %s361_s19 = sshll.u32 (!%p142_p9), %s162_s17, 4  ;;  %s372_s20 = sshll.u32 (!%p142_p9), %s541_s16, 8 }
  0x10   : > { %s164_s24 = scalar_lea.vmem (!%p142_p9), [#allocation2], %s361_s19  ;;  %s596_s16 = scalar_lea.sflag (!%p142_p9), [#allocation3], %s162_s17 }
  0x11   : > { %s295_s25 = sshll.u32 (!%p142_p9), %s164_s24, 4  ;;  %s497_s30 = smov (!%p142_p9), [#allocation2]   ;;  %s594_s25 = int_to_ptr.vmem [resolvable:$true] %s295_s25 }
  0x12   : > { %s435_s29 = scalar_lea.vmem (!%p142_p9), %s594_s25, 256  ;;  %s439_s4 = sshll.u32 (!%p142_p9), %s497_s30, 4  ;;  %s440_s4 = int_to_ptr.vmem [resolvable:$false] %s439_s4 }
  0x13   : > { %v175_v0 = vld [vmem:[%s637_s1 + $0x18] sm:$0xff]  ;;  %v174_v1 = vld [vmem:[%s637_s1 + $0x10] sm:$0xff]  ;;  %v173_v2 = vld [vmem:[%s637_s1 + $0x8] sm:$0xff]  ;;  %s647_s28 = smov (!%p166_p10, %s362_s28), 7  ;;  %vm185_vm0 = vcmask 261120   ;;  %p436_p11 = scmp.ne.s32.totalorder %s594_s25, %s435_s29 }
  0x14   : > { %379 = vmatprep.subr.mxu0 %v175_v0  ;;  %v172_v3 = vld [vmem:[%s637_s1] sm:$0xff]  ;;  %s363_s6 = sshll.u32 %s647_s28, 3  ;;  %s592_s28 = scalar_lea.hbm %s639_s3, %s372_s20 }
  0x15   : > { %380 = vmatpush3.msra.mxu0 %v175_v0  ;;  %s169_s9 = scalar_lea.vmem %s636_s0, %s363_s6  ;;  %v364_v6 = vld [vmem:[%s638_s2] ss:$0 sm:$0xff]  ;;  %p437_p12 = pnand %p436_p11, %p558_p5 }
  0x16   : > { %381 = vmatprep.subr.mxu0 %v174_v1  ;;  %v176_v4 = vld [vmem:[%s169_s9] sm:$0xff]  ;;  %v177_v5 = vld [vmem:[%s169_s9 + $0x8] sm:$0xff]  ;;  %s441_s5 = scalar_lea.vmem %s440_s4, 512  ;;  %p442_p0 = scmp.lt.s32.totalorder %s594_s25, %s440_s4 }
  0x17   : > { %382 = vmatpush3.msra.mxu0 %v174_v1  ;;  %387 = vmatprep.mubr.msk.f32.mxu0 %vm185_vm0, %v176_v4  ;;  %p438_p13 = pneg %p437_p12  ;;  %p443_p1 = scmp.lt.s32.totalorder %s441_s5, %s435_s29 }
  0x18   : > { %383 = vmatprep.subr.mxu0 %v173_v2 }
  0x19   : > { %384 = vmatpush3.msra.mxu0 %v173_v2  ;;  %p444_p2 = por %p443_p1, %p442_p0 }
  0x1a   : > { %385 = vmatprep.subr.mxu0 %v172_v3 }
  0x1b   : > { %386 = vmatpush3.msra.mxu0 %v172_v3  ;;  %p445_p3 = pnand %p444_p2, %p438_p13 }
  0x1c   : > { %388 = vmatmul.mubr.msk.f32.vlgmr.msra.gmra.mxu0 %vm185_vm0, %v177_v5 }
  0xdc   : > { %v389_v7 = vpop.f32.mrf.mxu0 }
  0xdd   : > { %v264_v8 = vadd.f32 %v389_v7, %v364_v6 }
  0xde   : > { %v258_v9 = vpop.f32.mrf.mxu0 }
  0xdf   : > { %v269_v10 = vmul.f32 1.442695, %v264_v8  ;;  %v259_v11 = vadd.f32 %v364_v6, %v258_v9 }
  0xe1   : > { %431 = vpow2.f32 %v269_v10  ;;  %v267_v12 = vmul.f32 1.442695, %v259_v11 }
  0xe3   : > { %433 = vpow2.f32 %v267_v12 }
  0xee   : > { %v432_v13 = vpop.eup %431 }
  0xef   : > { %v274_v14 = vmin.f32 %v432_v13, 3.4028235e+38  ;;  %vm272_vm1 = vcmp.ne.f32.partialorder %v432_v13, %v432_v13 }
  0xf0   : > { %v434_v15 = vpop.eup %433 }
  0xf1   : > { %v273_v16 = vmin.f32 %v434_v15, 3.4028235e+38  ;;  %vm271_vm2 = vcmp.ne.f32.partialorder %v434_v15, %v434_v15  ;;  %v276_v17 = vsel %vm272_vm1, 0.0, %v274_v14 }
  0xf2   : > { %v278_v18 = vadd.f32 0.0001, %v276_v17 }
  0xf3   : > { %v275_v19 = vsel %vm271_vm2, 0.0, %v273_v16 }
  0xf4   : > { %v277_v20 = vadd.f32 0.0001, %v275_v19  ;;  %280 = vst [vmem:[%s164_s24 + $0x8] sm:$0xff] %v278_v18 }
  0xf6   : > { %279 = vst [vmem:[%s164_s24] sm:$0xff] %v277_v20 }
  0xf7   : > { %448 = shalt.err (!%p445_p3)
}
  0xf8   : > { %s449_s6 = scalar_lea.hbm %s592_s28, 256  ;;  %s453_s9 = scalar_lea.hbm %s639_s3, 1024 }
  0xf9   : > { %p450_p4 = scmp.ne.s32.totalorder %s592_s28, %s449_s6  ;;  %p454_p9 = scmp.lt.s32.totalorder %s592_s28, %s639_s3 }
  0xfa   : > { %p455_p10 = scmp.lt.s32.totalorder %s453_s9, %s449_s6 }
  0xfb   : > { %p451_p7 = pnand %p450_p4, %p558_p5 }
  0xfc   : > { %p456_p11 = por %p455_p10, %p454_p9 }
  0xfd   : > { %p452_p8 = pneg %p451_p7 }
  0xff   : > { %p457_p12 = pnand %p456_p11, %p452_p8 }
 0x101   : > { %460 = shalt.err (!%p457_p12)
}
 0x102   : > { %s498_s17 = smov 128   ;;  %s499_s19 = smov 8  }
 0x103   : > { %390 = dma.vmem_to_hbm [thread:$0]  (%p558_p5), %s594_s25, 256, %s592_s28, %s596_s16, %s498_s17, %s498_s17, %s499_s19  }
 0x104 PF: > { %p396_p13 = scmp.ge.s32.totalorder %s495_s15, 2  ;;  %s310_s20 = sand.u32 1, %s483_s12  }
 0x105   : > { %s311_s24 = scalar_lea.sflag [#allocation3], %s310_s20 }
 0x106   : > { %p393_p0 = pnand %p396_p13, %p562_p6 }
 0x108   : > { %p394_p1 = pneg %p393_p0 }
 0x10a   : > { %478 = dma.done.wait (%p394_p1), %s311_s24, 256  }
 0x10b   : > { %480 = vsyncadd (%p394_p1), %s311_s24, 4294967040  ;;  %p13_p2 = scmp.ge.s32.totalorder %s545_s18, 6   ;;  %s642_s12 = smov %s487_s13 }
 0x10c   : > { %s643_s13 = smov %s491_s14  ;;  %s644_s14 = smov %s556_s21 }
 0x10d   : > { %s645_s15 = smov %s545_s18  ;;  %15 = sbr.rel (!%p13_p2) target bundleno = 3 (0x3), region = 67 }
 0x112   :  { %316 = vsyncpa [#allocation3], 1 }
 0x113   :  { %318 = vsyncpa [#allocation3 + $0x1], 1 }

</bundles_post_ra>
